<compile_context>
chip_gen: v5e
topology: v5e:2x2
jax: 0.10.0
libtpu: 0.0.40
codegen_flags: <defaults>
</compile_context>

<pallas_src>
import math
import functools

import jax
import jax.numpy as jnp
from jax.experimental import pallas as pl
from jax.experimental.pallas import tpu as pltpu

EPSILON = 1e-7  # ML-Agents distributions EPSILON
_LOG_SQRT_2PI = math.log(math.sqrt(2.0 * math.pi))


def _round_up(x: int, m: int) -> int:
    return ((x + m - 1) // m) * m


def _num_tensorcores() -> int:
    """Perf heuristic only: 'parallel' grid axes are sharded across TensorCores
    on megacore parts (v4/v5p fused cores, v7x = 2 TC/chip); v5e/v6e = 1 TC."""
    try:
        kind = jax.devices()[0].device_kind.lower()
    except Exception:
        return 1
    if "v7" in kind:
        return 2
    if "v5p" in kind:
        return 2
    if "v4" in kind and "lite" not in kind:
        return 2
    return 1


def _choose_tile_b(batch: int, hidden: int, act: int, requested: int) -> int:
    """Pick a batch tile.

    Invariant: block is either the FULL batch dim or a multiple of 8 sublanes.
    - Go as large as the VMEM budget allows (per-grid-step overhead ~0.35us
      dominates small tiles; useful DMA per step should be >= ~1 MiB).
    - Only force >= 2 equal grid steps on multi-TC (megacore) chips; on
      single-TC v5e/v6e that clamp just doubles step overhead.
    """
    if batch <= 16:
        return batch  # full-dim block, always legal

    # VMEM budget: double-buffered (tb, H) input + double-buffered (tb, 2A)
    # fused output, in f32.  Keep well under the smallest scoped default
    # (v5e: 16 MiB) so no vmem_limit_bytes override is needed on any chip.
    budget_bytes = 12 * 1024 * 1024
    per_row_bytes = 4 * (2 * hidden + 2 * 2 * act)
    cap = max(8, (budget_bytes // per_row_bytes) // 8 * 8)

    tb = min(requested, cap, _round_up(batch, 8))

    n_tc = _num_tensorcores()
    if n_tc > 1 and batch >= 2 * 8:
        # one (or k) equal-size block(s) per TensorCore for megacore sharding
        tb = min(tb, _round_up(pl.cdiv(batch, n_tc), 8))

    tb = _round_up(tb, 8)
    if tb >= batch:
        return batch
    return tb


def _action_model_kernel(x_ref, w_ref, p_ref, out_ref):
    # x: (TB, H) activations; w: (H, 2A) mu-head weight tiled twice along lanes.
    # p: (4, 2A) per-lane constants precomputed in the wrapper:
    #   p[0] = [b_mu        | b_mu      ]   (bias, tiled)
    #   p[1] = [0           | -coef     ]   coef = act_mask^2 / (2*sigma^2+eps)
    #   p[2] = [1-act_mask  | 0         ]
    #   p[3] = [0           | logp_const]   logp_const = -log(sigma+eps)-log(sqrt(2pi))
    # so (c_lin + c_quad*mu)*mu + c_const yields
    #   lanes [0:A)  : (1-mask)*mu            (masked deterministic action)
    #   lanes [A:2A) : logp_const - coef*mu^2 (log prob, (act-mu)^2 == mask^2*mu^2)
    p = p_ref[...]
    bias = p[0:1, :]
    c_quad = p[1:2, :]
    c_lin = p[2:3, :]
    c_const = p[3:4, :]

    mu = jnp.dot(x_ref[...], w_ref[...],
                 preferred_element_type=jnp.float32) + bias
    out_ref[...] = (c_lin + c_quad * mu) * mu + c_const


def _xla_forward(inputs, w_mu, b_mu, log_sigma, act_mask):
    """Small-batch fallback: a fused XLA matmul+elementwise beats the
    pallas_call fixed launch cost at RL-inference batch sizes."""
    mu = inputs @ w_mu + b_mu
    sigma = jnp.exp(jnp.clip(log_sigma.astype(jnp.float32), -20.0, 2.0))
    act = (1.0 - act_mask) * mu
    var = sigma * sigma
    logp = (-((act - mu) ** 2) / (2.0 * var + EPSILON)
            - jnp.log(sigma + EPSILON) - _LOG_SQRT_2PI)
    ent = jnp.mean(0.5 * jnp.log(2.0 * math.pi * math.e * var + EPSILON))
    entropy_sum = jnp.full((inputs.shape[0],), ent, dtype=jnp.float32)
    return act, logp, entropy_sum


def action_model_forward(inputs, w_mu, b_mu, log_sigma, act_mask, *,
                         tile_b=8192, min_pallas_batch=256):
    """ActionModel.forward (continuous-only, deterministic):
    returns (continuous_action, continuous_log_probs, entropy_sum)."""
    B, H = inputs.shape
    A = w_mu.shape[1]

    if B < min_pallas_batch:
        return _xla_forward(inputs, w_mu, b_mu, log_sigma, act_mask)

    # ---- state-independent (1, A) math hoisted out of the kernel ----
    log_sigma_c = jnp.clip(log_sigma.astype(jnp.float32), -20.0, 2.0)
    sigma = jnp.exp(log_sigma_c)                                       # (1, A)
    coef = (act_mask * act_mask) / (2.0 * sigma * sigma + EPSILON)     # (1, A)
    logp_const = -jnp.log(sigma + EPSILON) - _LOG_SQRT_2PI             # (1, A)
    one_minus_mask = 1.0 - act_mask                                    # (1, A)
    zeros = jnp.zeros_like(coef)

    # Fused 2A-wide operands: lanes [0:A) -> action, lanes [A:2A) -> log_prob.
    w_fused = jnp.concatenate([w_mu, w_mu], axis=1).astype(jnp.float32)   # (H, 2A)
    bias_f = jnp.concatenate([b_mu, b_mu], axis=1)
    c_quad = jnp.concatenate([zeros, -coef], axis=1)
    c_lin = jnp.concatenate([one_minus_mask, zeros], axis=1)
    c_const = jnp.concatenate([zeros, logp_const], axis=1)
    params = jnp.concatenate([bias_f, c_quad, c_lin, c_const],
                             axis=0).astype(jnp.float32)                  # (4, 2A)

    # Entropy of N(mu, sigma) is input-independent: one scalar broadcast to (B,).
    ent_row = 0.5 * jnp.log(2.0 * math.pi * math.e * sigma * sigma + EPSILON)
    entropy_sum = jnp.full((B,), jnp.mean(ent_row), dtype=jnp.float32)

    tb = _choose_tile_b(B, H, A, tile_b)
    grid = (pl.cdiv(B, tb),)

    cost = pl.CostEstimate(
        flops=2 * B * H * (2 * A),
        transcendentals=0,
        bytes_accessed=4 * (B * H + B * 2 * A + H * 2 * A + 4 * 2 * A),
    )

    fused = pl.pallas_call(
        _action_model_kernel,
        out_shape=jax.ShapeDtypeStruct((B, 2 * A), jnp.float32),
        grid_spec=pltpu.PrefetchScalarGridSpec(
            num_scalar_prefetch=0,
            grid=grid,
            in_specs=[
                pl.BlockSpec((tb, H), lambda i: (i, 0)),       # activations
                pl.BlockSpec((H, 2 * A), lambda i: (0, 0)),    # tiled mu weight
                pl.BlockSpec((4, 2 * A), lambda i: (0, 0)),    # packed constants
            ],
            out_specs=pl.BlockSpec((tb, 2 * A), lambda i: (i, 0)),
        ),
        compiler_params=pltpu.CompilerParams(dimension_semantics=("parallel",)),
        cost_estimate=cost,
    )(inputs.astype(jnp.float32), w_fused, params)

    action = fused[:, :A]
    logp = fused[:, A:]
    # convert_action_back: identity (see TODO at top).
    return action, logp, entropy_sum


def _reference_forward(inputs, w_mu, b_mu, log_sigma, act_mask):
    """Pure-JAX reference of the same forward pass (for correctness check)."""
    mu = inputs @ w_mu + b_mu
    sigma = jnp.exp(jnp.clip(log_sigma, -20.0, 2.0))
    sigma = jnp.broadcast_to(sigma, mu.shape)
    act = (1.0 - jnp.broadcast_to(act_mask, mu.shape)) * mu
    var = sigma * sigma
    logp = (-((act - mu) ** 2) / (2.0 * var + EPSILON)
            - jnp.log(sigma + EPSILON)
            - math.log(math.sqrt(2.0 * math.pi)))
    ent = jnp.mean(0.5 * jnp.log(2.0 * math.pi * math.e * var + EPSILON),
                   axis=1, keepdims=True)
    return act, logp, ent[:, 0]


def _make_inputs(B, H, A, seed=0):
    key = jax.random.PRNGKey(seed)
    k_x, k_w, k_ls, _ = jax.random.split(key, 4)
    inputs = jax.random.normal(k_x, (B, H), dtype=jnp.float32)
    # init_weights(): uniform(-0.01, 0.01) weight, zero bias
    w_mu = jax.random.uniform(k_w, (H, A), dtype=jnp.float32,
                              minval=-0.01, maxval=0.01)
    b_mu = jnp.zeros((1, A), dtype=jnp.float32)
    log_sigma = 0.1 * jax.random.normal(k_ls, (1, A), dtype=jnp.float32)
    # limb action mask: mask out the last two action dims (deterministic)
    act_mask = jnp.zeros((1, A), dtype=jnp.float32).at[0, A - 2:].set(1.0)
    return inputs, w_mu, b_mu, log_sigma, act_mask


def _run_case(B, H, A, *, min_pallas_batch, seed=0):
    args = _make_inputs(B, H, A, seed)
    fwd = jax.jit(functools.partial(action_model_forward,
                                    min_pallas_batch=min_pallas_batch))
    action, log_probs, entropy_sum = fwd(*args)
    jax.block_until_ready((action, log_probs, entropy_sum))

    ref_a, ref_lp, ref_es = _reference_forward(*args)
    assert jnp.allclose(action, ref_a, atol=1e-5, rtol=1e-5)
    assert jnp.allclose(log_probs, ref_lp, atol=1e-5, rtol=1e-5)
    assert jnp.allclose(entropy_sum, ref_es, atol=1e-5, rtol=1e-5)


if __name__ == "__main__":
    # GaussianDistribution0 input size = 16 * 4 = 64, continuous_size (A) = 8.
    # Case 1: moderate batch, Pallas path forced (single big block on 1-TC
    #         chips, 2 equal blocks on megacore chips).
    _run_case(B=64, H=64, A=8, min_pallas_batch=0)
    # Case 2: tiny batch, Pallas path forced (full-batch single-block path).
    _run_case(B=8, H=64, A=8, min_pallas_batch=0)
    # Case 3: larger batch through the default dispatch (Pallas path).
    _run_case(B=2048, H=64, A=8, min_pallas_batch=256)
    # Case 4: tiny batch through the default dispatch (pure-XLA fallback).
    _run_case(B=4, H=64, A=8, min_pallas_batch=256)
    print("KERNEL_OK")
</pallas_src>

<mosaic_0001>
module attributes {stable_mosaic.version = 11 : i64} {
  func.func @_action_model_kernel(%arg0: i32, %arg1: memref<64x64xf32, #tpu.memory_space<vmem>>, %arg2: memref<64x16xf32, #tpu.memory_space<vmem>>, %arg3: memref<4x16xf32, #tpu.memory_space<vmem>>, %arg4: memref<64x16xf32, #tpu.memory_space<vmem>>) attributes {dimension_semantics = [#tpu.dimension_semantics<parallel>], iteration_bounds = array<i64: 1>, scalar_prefetch = 0 : i64, scratch_operands = 0 : i64, tpu.core_type = #tpu.core_type<tc>, window_params = [{transform_indices = @transform_0, window_bounds = array<i64: 64, 64>}, {pipeline_mode = #tpu.pipeline_mode<synchronous>, transform_indices = @transform_1, window_bounds = array<i64: 64, 16>}, {pipeline_mode = #tpu.pipeline_mode<synchronous>, transform_indices = @transform_2, window_bounds = array<i64: 4, 16>}, {transform_indices = @transform_3, window_bounds = array<i64: 64, 16>}]} {
    %c0 = arith.constant 0 : index
    %c0_0 = arith.constant 0 : index
    %0 = vector.load %arg3[%c0, %c0_0] : memref<4x16xf32, #tpu.memory_space<vmem>>, vector<4x16xf32>
    %1 = vector.extract_strided_slice %0 {offsets = [0, 0], sizes = [1, 16], strides = [1, 1]} : vector<4x16xf32> to vector<1x16xf32>
    %2 = vector.extract_strided_slice %0 {offsets = [1, 0], sizes = [1, 16], strides = [1, 1]} : vector<4x16xf32> to vector<1x16xf32>
    %3 = vector.extract_strided_slice %0 {offsets = [2, 0], sizes = [1, 16], strides = [1, 1]} : vector<4x16xf32> to vector<1x16xf32>
    %4 = vector.extract_strided_slice %0 {offsets = [3, 0], sizes = [1, 16], strides = [1, 1]} : vector<4x16xf32> to vector<1x16xf32>
    %c0_1 = arith.constant 0 : index
    %c0_2 = arith.constant 0 : index
    %5 = vector.load %arg1[%c0_1, %c0_2] : memref<64x64xf32, #tpu.memory_space<vmem>>, vector<64x64xf32>
    %c0_3 = arith.constant 0 : index
    %c0_4 = arith.constant 0 : index
    %6 = vector.load %arg2[%c0_3, %c0_4] : memref<64x16xf32, #tpu.memory_space<vmem>>, vector<64x16xf32>
    %cst = arith.constant dense<0.000000e+00> : vector<64x16xf32>
    %7 = tpu.matmul %5, %6, %cst {dimension_numbers = #tpu.dot_dimension_numbers<[1], [0], [0], [1], [0, 0, 1, 1], [], []>} : vector<64x64xf32>, vector<64x16xf32>, vector<64x16xf32> -> vector<64x16xf32>
    %8 = vector.broadcast %1 : vector<1x16xf32> to vector<64x16xf32>
    %9 = arith.addf %7, %8 : vector<64x16xf32>
    %10 = vector.broadcast %2 : vector<1x16xf32> to vector<64x16xf32>
    %11 = arith.mulf %10, %9 : vector<64x16xf32>
    %12 = vector.broadcast %3 : vector<1x16xf32> to vector<64x16xf32>
    %13 = arith.addf %12, %11 : vector<64x16xf32>
    %14 = arith.mulf %13, %9 : vector<64x16xf32>
    %15 = vector.broadcast %4 : vector<1x16xf32> to vector<64x16xf32>
    %16 = arith.addf %14, %15 : vector<64x16xf32>
    %c0_5 = arith.constant 0 : index
    %c0_6 = arith.constant 0 : index
    %17 = vector.load %arg4[%c0_5, %c0_6] : memref<64x16xf32, #tpu.memory_space<vmem>>, vector<64x16xf32>
    tpu.vector_store %arg4[%c0_5, %c0_6], %16 {strides = array<i32>} : memref<64x16xf32, #tpu.memory_space<vmem>>, vector<64x16xf32>,
    return
  }
  func.func @transform_0(%arg0: i32) -> (i32, i32) {
    %c0_i32 = arith.constant 0 : i32
    %c0_i32_0 = arith.constant 0 : i32
    return %arg0, %c0_i32 : i32, i32
  }
  func.func @transform_1(%arg0: i32) -> (i32, i32) {
    %c0_i32 = arith.constant 0 : i32
    %c0_i32_0 = arith.constant 0 : i32
    %c0_i32_1 = arith.constant 0 : i32
    return %c0_i32, %c0_i32_0 : i32, i32
  }
  func.func @transform_2(%arg0: i32) -> (i32, i32) {
    %c0_i32 = arith.constant 0 : i32
    %c0_i32_0 = arith.constant 0 : i32
    %c0_i32_1 = arith.constant 0 : i32
    return %c0_i32, %c0_i32_0 : i32, i32
  }
  func.func @transform_3(%arg0: i32) -> (i32, i32) {
    %c0_i32 = arith.constant 0 : i32
    %c0_i32_0 = arith.constant 0 : i32
    return %arg0, %c0_i32 : i32, i32
  }
}

</mosaic_0001>

<bundles_post_ra>
// kernel: action_model_forward.1
= control target key start
LH: loop header
LB: loop body
LE: loop exit
PB: predicated region body
PF: predicated region fallthrough
CT: control target
= control target key end

     0   :  { %vm32_vm0 = vcmask 523264   ;;  %vm133_vm1 = vcmask 130048   ;;  %s289_s1 = inlined_call_operand.vmem [shape: f32[64,16], index: 1, kind: input, shape index: {}]   ;;  %s290_s0 = inlined_call_operand.vmem [shape: f32[64,64], index: 0, kind: input, shape index: {}]   ;;  %s291_s2 = inlined_call_operand.vmem [shape: f32[4,16], index: 2, kind: input, shape index: {}]   ;;  %s292_s3 = inlined_call_operand.vmem [shape: f32[64,16], index: 3, kind: output, shape index: {}]  }
   0x1   :  { %v30_v0 = vld [vmem:[%s289_s1 + $0x38] sm:$0xff]  ;;  %v29_v1 = vld [vmem:[%s289_s1 + $0x30] sm:$0xff]  ;;  %v28_v2 = vld [vmem:[%s289_s1 + $0x28] sm:$0xff] }
   0x2   :  { %155 = vmatpush.msra.mxu2 %v30_v0  ;;  %156 = vmatpush.msra.mxu3 %v30_v0  ;;  %v27_v3 = vld [vmem:[%s289_s1 + $0x20] sm:$0xff]  ;;  %v26_v4 = vld [vmem:[%s289_s1 + $0x18] sm:$0xff]  ;;  %v25_v5 = vld [vmem:[%s289_s1 + $0x10] sm:$0xff] }
   0x3   :  { %65 = vmatpush.msra.mxu0 %v30_v0  ;;  %154 = vmatpush.msra.mxu1 %v30_v0  ;;  %v24_v6 = vld [vmem:[%s289_s1 + $0x8] sm:$0xff]  ;;  %v23_v7 = vld [vmem:[%s289_s1] sm:$0xff]  ;;  %v21_v9 = vld [vmem:[%s290_s0 + $0x30] sm:$0xff] }
   0x4   :  { %158 = vmatpush.msra.mxu2 %v29_v1  ;;  %159 = vmatpush.msra.mxu3 %v29_v1  ;;  %v19_v8 = vld [vmem:[%s290_s0 + $0x20] sm:$0xff]  ;;  %v17_v11 = vld [vmem:[%s290_s0 + $0x10] sm:$0xff]  ;;  %v20_v12 = vld [vmem:[%s290_s0 + $0x28] sm:$0xff] }
   0x5   :  { %66 = vmatpush.msra.mxu0 %v29_v1  ;;  %157 = vmatpush.msra.mxu1 %v29_v1  ;;  %v15_v10 = vld [vmem:[%s290_s0] sm:$0xff]  ;;  %v22_v13 = vld [vmem:[%s290_s0 + $0x38] sm:$0xff]  ;;  %v16_v14 = vld [vmem:[%s290_s0 + $0x8] sm:$0xff] }
   0x6   :  { %161 = vmatpush.msra.mxu2 %v28_v2  ;;  %162 = vmatpush.msra.mxu3 %v28_v2  ;;  %v18_v15 = vld [vmem:[%s290_s0 + $0x18] sm:$0xff]  ;;  %v14_v16 = vld [vmem:[%s291_s2] sm:$0xf] }
   0x7   :  { %67 = vmatpush.msra.mxu0 %v28_v2  ;;  %160 = vmatpush.msra.mxu1 %v28_v2  ;;  %v31_v17 = vperm.slane %v14_v16, 0  ;;  %v98_v18 = vperm.slane %v14_v16, 1  ;;  %v107_v22 = vperm.slane %v14_v16, 2  ;;  %v124_v26 = vperm.slane %v14_v16, 3 }
   0x8   :  { %164 = vmatpush.msra.mxu2 %v27_v3  ;;  %165 = vmatpush.msra.mxu3 %v27_v3 }
   0x9   :  { %68 = vmatpush.msra.mxu0 %v27_v3  ;;  %163 = vmatpush.msra.mxu1 %v27_v3 }
   0xa   :  { %167 = vmatpush.msra.mxu2 %v26_v4  ;;  %168 = vmatpush.msra.mxu3 %v26_v4 }
   0xb   :  { %69 = vmatpush.msra.mxu0 %v26_v4  ;;  %166 = vmatpush.msra.mxu1 %v26_v4 }
   0xc   :  { %170 = vmatpush.msra.mxu2 %v25_v5  ;;  %171 = vmatpush.msra.mxu3 %v25_v5 }
   0xd   :  { %70 = vmatpush.msra.mxu0 %v25_v5  ;;  %169 = vmatpush.msra.mxu1 %v25_v5 }
   0xe   :  { %173 = vmatpush.msra.mxu2 %v24_v6  ;;  %174 = vmatpush.msra.mxu3 %v24_v6 }
   0xf   :  { %71 = vmatpush.msra.mxu0 %v24_v6  ;;  %172 = vmatpush.msra.mxu1 %v24_v6 }
  0x10   :  { %176 = vmatpush.msra.mxu2 %v23_v7  ;;  %177 = vmatpush.msra.mxu3 %v23_v7 }
  0x11   :  { %150 = vmatmul.msk.f32.vlgmr.msra.gmra.mxu2 %vm32_vm0, %v19_v8  ;;  %152 = vmatmul.msk.f32.vlgmr.msra.gmra.mxu3 %vm32_vm0, %v21_v9 }
  0x12   :  { %72 = vmatpush.msra.mxu0 %v23_v7  ;;  %175 = vmatpush.msra.mxu1 %v23_v7 }
  0x13   :  { %146 = vmatmul.msk.f32.vlgmr.msra.gmra.mxu0 %vm32_vm0, %v15_v10  ;;  %148 = vmatmul.msk.f32.vlgmr.msra.gmra.mxu1 %vm32_vm0, %v17_v11 }
  0x19   :  { %151 = vmatmul.msk.f32.gmra.mxu2 %vm32_vm0, %v20_v12  ;;  %153 = vmatmul.msk.f32.gmra.mxu3 %vm32_vm0, %v22_v13 }
  0x1b   :  { %147 = vmatmul.msk.f32.gmra.mxu0 %vm32_vm0, %v16_v14  ;;  %149 = vmatmul.msk.f32.gmra.mxu1 %vm32_vm0, %v18_v15 }
  0x90   :  { %v74_v19 = vpop.f32.mrf.mxu0  ;;  %v80_v20 = vpop.f32.mrf.mxu1 }
  0x91   :  { %v75_v21 = vadd.f32 %v74_v19, %v31_v17  ;;  %v81_v23 = vadd.f32 %v80_v20, %v31_v17 }
  0x93   :  { %v99_v24 = vmul.f32 %v98_v18, %v75_v21  ;;  %v101_v25 = vmul.f32 %v98_v18, %v81_v23 }
  0x94   :  { %v86_v27 = vpop.f32.mrf.mxu2  ;;  %v92_v28 = vpop.f32.mrf.mxu3 }
  0x95   :  { %v108_v29 = vadd.f32 %v107_v22, %v99_v24  ;;  %v110_v30 = vadd.f32 %v107_v22, %v101_v25  ;;  %v87_v31 = vadd.f32 %v86_v27, %v31_v17  ;;  %v93_v32 = vadd.f32 %v92_v28, %v31_v17 }
  0x97   :  { %v116_v33 = vmul.f32 %v108_v29, %v75_v21  ;;  %v118_v34 = vmul.f32 %v110_v30, %v81_v23  ;;  %v103_v35 = vmul.f32 %v98_v18, %v87_v31  ;;  %v105_v36 = vmul.f32 %v98_v18, %v93_v32 }
  0x98   :  { %v77_v37 = vpop.f32.mrf.mxu0  ;;  %v83_v38 = vpop.f32.mrf.mxu1 }
  0x99   :  { %v125_v39 = vadd.f32 %v124_v26, %v116_v33  ;;  %v127_v40 = vadd.f32 %v124_v26, %v118_v34  ;;  %v112_v41 = vadd.f32 %v107_v22, %v103_v35  ;;  %v114_v42 = vadd.f32 %v107_v22, %v105_v36 }
  0x9a   :  { %v78_v43 = vadd.f32 %v77_v37, %v31_v17  ;;  %v84_v44 = vadd.f32 %v83_v38, %v31_v17 }
  0x9b   :  { %134 = vst.msk [vmem:[%s292_s3] sm:$0xff] %vm133_vm1, %v125_v39  ;;  %v120_v45 = vmul.f32 %v112_v41, %v87_v31  ;;  %v122_v46 = vmul.f32 %v114_v42, %v93_v32 }
  0x9c   :  { %136 = vst.msk [vmem:[%s292_s3 + $0x10] sm:$0xff] %vm133_vm1, %v127_v40  ;;  %v100_v47 = vmul.f32 %v98_v18, %v78_v43  ;;  %v102_v48 = vmul.f32 %v98_v18, %v84_v44  ;;  %v89_v49 = vpop.f32.mrf.mxu2  ;;  %v95_v50 = vpop.f32.mrf.mxu3 }
  0x9d   :  { %v129_v51 = vadd.f32 %v124_v26, %v120_v45  ;;  %v131_v52 = vadd.f32 %v124_v26, %v122_v46  ;;  %v90_v53 = vadd.f32 %v89_v49, %v31_v17  ;;  %v96_v54 = vadd.f32 %v95_v50, %v31_v17 }
  0x9e   :  { %v109_v55 = vadd.f32 %v107_v22, %v100_v47  ;;  %v111_v56 = vadd.f32 %v107_v22, %v102_v48 }
  0x9f   :  { %138 = vst.msk [vmem:[%s292_s3 + $0x20] sm:$0xff] %vm133_vm1, %v129_v51  ;;  %v104_v57 = vmul.f32 %v98_v18, %v90_v53  ;;  %v106_v58 = vmul.f32 %v98_v18, %v96_v54 }
  0xa0   :  { %140 = vst.msk [vmem:[%s292_s3 + $0x30] sm:$0xff] %vm133_vm1, %v131_v52  ;;  %v117_v59 = vmul.f32 %v109_v55, %v78_v43  ;;  %v119_v60 = vmul.f32 %v111_v56, %v84_v44 }
  0xa1   :  { %v113_v61 = vadd.f32 %v107_v22, %v104_v57  ;;  %v115_v62 = vadd.f32 %v107_v22, %v106_v58 }
  0xa2   :  { %v126_v63 = vadd.f32 %v124_v26, %v117_v59  ;;  %v128_v0 = vadd.f32 %v124_v26, %v119_v60 }
  0xa3   :  { %v121_v1 = vmul.f32 %v113_v61, %v90_v53  ;;  %v123_v2 = vmul.f32 %v115_v62, %v96_v54 }
  0xa4   :  { %135 = vst.msk [vmem:[%s292_s3 + $0x8] sm:$0xff] %vm133_vm1, %v126_v63 }
  0xa5   :  { %137 = vst.msk [vmem:[%s292_s3 + $0x18] sm:$0xff] %vm133_vm1, %v128_v0  ;;  %v130_v3 = vadd.f32 %v124_v26, %v121_v1  ;;  %v132_v4 = vadd.f32 %v124_v26, %v123_v2 }
  0xa7   :  { %139 = vst.msk [vmem:[%s292_s3 + $0x28] sm:$0xff] %vm133_vm1, %v130_v3 }
  0xa8   :  { %141 = vst.msk [vmem:[%s292_s3 + $0x38] sm:$0xff] %vm133_vm1, %v132_v4 }

</bundles_post_ra>
